<compile_context>
chip_gen: v7x
topology: tpu7x:2x2x1
jax: 0.10.0
libtpu: 0.0.40
codegen_flags: <defaults>
</compile_context>

<pallas_src>
import functools

import jax
import jax.numpy as jnp
from jax.experimental import pallas as pl
from jax.experimental.pallas import tpu as pltpu


def _round_up(x, m):
    return ((x + m - 1) // m) * m


def _l2shared_dpg_forward_kernel(
    s_ref,
    w_s1_ref, b_s1_ref, w_s2_ref, b_s2_ref,          # enc_s
    w_d1_ref, b_d1_ref,                               # L3DenseNet.dense1
    w_d2s_ref, w_d2d_ref, b_d2_ref,                   # L3DenseNet.dense2 (split)
    w_a1s_ref, w_a1d1_ref, w_a1d2_ref, b_a1_ref,      # dec_a layer 1 (split)
    w_a2_ref, b_a2_ref,                               # dec_a layer 2
    a_ref,
):
    cdt = w_s1_ref.dtype  # compute dtype for MXU operands (f32 or bf16)

    def mm(x, w_ref):
        return jnp.dot(x.astype(cdt), w_ref[...],
                       preferred_element_type=jnp.float32)

    x = s_ref[...]

    # --- enc_s: Linear -> ReLU -> Linear ---
    h = jnp.maximum(mm(x, w_s1_ref) + b_s1_ref[...], 0.0)
    s_ = mm(h, w_s2_ref) + b_s2_ref[...]

    # --- L3DenseNet (concats removed via weight splitting) ---
    d1 = jnp.maximum(mm(s_, w_d1_ref) + b_d1_ref[...], 0.0)
    # d2 = relu(concat([s_, d1]) @ W_d2 + b_d2)
    d2 = jnp.maximum(mm(s_, w_d2s_ref) + mm(d1, w_d2d_ref) + b_d2_ref[...], 0.0)

    # --- dec_a: Linear -> ReLU -> Linear -> Tanh ---
    # g = relu(concat([s_, d1, d2]) @ W_a1 + b_a1)
    g = jnp.maximum(
        mm(s_, w_a1s_ref) + mm(d1, w_a1d1_ref) + mm(d2, w_a1d2_ref)
        + b_a1_ref[...], 0.0)
    a = mm(g, w_a2_ref) + b_a2_ref[...]
    a_ref[...] = jnp.tanh(a).astype(a_ref.dtype)


@functools.partial(jax.jit, static_argnames=("tb", "compute_dtype"))
def l2shared_dpg_forward(s, params, *, tb=512, compute_dtype=jnp.float32):
    """params: dict of (in, out) weights and (1, out) biases (see init_params)."""
    batch, state_dim = s.shape
    action_dim = params["w_a2"].shape[1]
    lay = params["w_d1"].shape[0]

    # Batch tile: multiple of 8 sublanes, at most `tb`, at least one full tile.
    tb = max(8, min(tb, _round_up(batch, 8)))
    padded = _round_up(batch, tb)
    if padded != batch:
        s = jnp.pad(s, ((0, padded - batch), (0, 0)))
    grid = (padded // tb,)

    cdt = compute_dtype
    # Weights in compute dtype; biases stay f32 (accumulator dtype).
    w = {k: (v.astype(cdt) if k.startswith("w") else v.astype(jnp.float32))
         for k, v in params.items()}

    operands = (
        s.astype(cdt),
        w["w_s1"], w["b_s1"], w["w_s2"], w["b_s2"],
        w["w_d1"], w["b_d1"],
        # Pre-split concat-facing weights (no in-kernel slicing or concat).
        w["w_d2"][:lay], w["w_d2"][lay:], w["b_d2"],
        w["w_a1"][:lay], w["w_a1"][lay:2 * lay], w["w_a1"][2 * lay:], w["b_a1"],
        w["w_a2"], w["b_a2"],
    )

    def row_spec(ncols):
        return pl.BlockSpec((tb, ncols), lambda i: (i, 0))

    def resident_spec(arr):
        # Constant index_map -> block never changes -> stays VMEM-resident.
        return pl.BlockSpec(arr.shape, lambda i: (0, 0))

    in_specs = [row_spec(state_dim)] + [resident_spec(op) for op in operands[1:]]

    out = pl.pallas_call(
        _l2shared_dpg_forward_kernel,
        out_shape=jax.ShapeDtypeStruct((padded, action_dim), jnp.float32),
        grid=grid,
        in_specs=in_specs,
        out_specs=row_spec(action_dim),
        compiler_params=pltpu.CompilerParams(
            dimension_semantics=("parallel",)),
    )(*operands)
    return out[:batch]


def init_params(key, state_dim, action_dim, mid_dim):
    """Deterministic synthetic init matching the PyTorch module's shapes.

    PyTorch nn.Linear(in, out) has weight (out, in); we store the transpose
    (in, out) and biases as (1, out) so the kernel can broadcast them.
    """
    lay = mid_dim // 2            # L3DenseNet lay_dim (= inp_dim)
    out_dim = lay * 4             # L3DenseNet out_dim

    shapes = {
        # enc_s
        "w_s1": (state_dim, mid_dim), "b_s1": (1, mid_dim),
        "w_s2": (mid_dim, lay),       "b_s2": (1, lay),
        # L3DenseNet
        "w_d1": (lay, lay),           "b_d1": (1, lay),
        "w_d2": (2 * lay, 2 * lay),   "b_d2": (1, 2 * lay),
        # dec_a
        "w_a1": (out_dim, mid_dim),   "b_a1": (1, mid_dim),
        "w_a2": (mid_dim, action_dim), "b_a2": (1, action_dim),
    }
    params = {}
    for i, (name, shape) in enumerate(sorted(shapes.items())):
        k = jax.random.fold_in(key, i)
        fan_in = shape[0] if name.startswith("w") else shapes["w" + name[1:]][0]
        bound = 1.0 / jnp.sqrt(jnp.float32(fan_in))
        params[name] = jax.random.uniform(
            k, shape, dtype=jnp.float32, minval=-bound, maxval=bound
        )
    return params


def _reference_forward(s, p):
    """Plain-JAX reference of the PyTorch forward (noise_std=0.0)."""
    h = jnp.maximum(s @ p["w_s1"] + p["b_s1"], 0.0)
    s_ = h @ p["w_s2"] + p["b_s2"]
    d1 = jnp.maximum(s_ @ p["w_d1"] + p["b_d1"], 0.0)
    x2 = jnp.concatenate([s_, d1], axis=1)
    d2 = jnp.maximum(x2 @ p["w_d2"] + p["b_d2"], 0.0)
    x3 = jnp.concatenate([x2, d2], axis=1)
    g = jnp.maximum(x3 @ p["w_a1"] + p["b_a1"], 0.0)
    return jnp.tanh(g @ p["w_a2"] + p["b_a2"])


if __name__ == "__main__":
    # TODO(synk): add_noise / critic / next_q_action paths (stochastic noise
    # branch) are not part of forward(noise_std=0.0) and are not implemented.
    state_dim, action_dim, mid_dim = 16, 4, 32

    key = jax.random.PRNGKey(0)
    params = init_params(key, state_dim, action_dim, mid_dim)

    # Small batch: single grid step (whole batch is one tile).
    batch = 8
    s = jax.random.normal(jax.random.fold_in(key, 100), (batch, state_dim),
                          dtype=jnp.float32)
    a = jax.block_until_ready(l2shared_dpg_forward(s, params))
    a_ref = _reference_forward(s, params)
    assert a.shape == (batch, action_dim)
    assert jnp.allclose(a, a_ref, atol=2e-5, rtol=2e-5)

    # Larger batch: exercises the batch grid (multiple steps + padded tail).
    batch2 = 40
    s2 = jax.random.normal(jax.random.fold_in(key, 200), (batch2, state_dim),
                           dtype=jnp.float32)
    a2 = jax.block_until_ready(l2shared_dpg_forward(s2, params, tb=16))
    a2_ref = _reference_forward(s2, params)
    assert a2.shape == (batch2, action_dim)
    assert jnp.allclose(a2, a2_ref, atol=2e-5, rtol=2e-5)

    print("KERNEL_OK")
</pallas_src>

<mosaic_0001>
module attributes {stable_mosaic.version = 11 : i64} {
  func.func @_l2shared_dpg_forward_kernel(%arg0: i32, %arg1: memref<8x16xf32, #tpu.memory_space<vmem>>, %arg2: memref<16x32xf32, #tpu.memory_space<vmem>>, %arg3: memref<1x32xf32, #tpu.memory_space<vmem>>, %arg4: memref<32x16xf32, #tpu.memory_space<vmem>>, %arg5: memref<1x16xf32, #tpu.memory_space<vmem>>, %arg6: memref<16x16xf32, #tpu.memory_space<vmem>>, %arg7: memref<1x16xf32, #tpu.memory_space<vmem>>, %arg8: memref<16x32xf32, #tpu.memory_space<vmem>>, %arg9: memref<16x32xf32, #tpu.memory_space<vmem>>, %arg10: memref<1x32xf32, #tpu.memory_space<vmem>>, %arg11: memref<16x32xf32, #tpu.memory_space<vmem>>, %arg12: memref<16x32xf32, #tpu.memory_space<vmem>>, %arg13: memref<32x32xf32, #tpu.memory_space<vmem>>, %arg14: memref<1x32xf32, #tpu.memory_space<vmem>>, %arg15: memref<32x4xf32, #tpu.memory_space<vmem>>, %arg16: memref<1x4xf32, #tpu.memory_space<vmem>>, %arg17: memref<8x4xf32, #tpu.memory_space<vmem>>) attributes {dimension_semantics = [#tpu.dimension_semantics<parallel>], iteration_bounds = array<i64: 1>, scalar_prefetch = 0 : i64, scratch_operands = 0 : i64, tpu.core_type = #tpu.core_type<tc>, window_params = [{transform_indices = @transform_0, window_bounds = array<i64: 8, 16>}, {pipeline_mode = #tpu.pipeline_mode<synchronous>, transform_indices = @transform_1, window_bounds = array<i64: 16, 32>}, {pipeline_mode = #tpu.pipeline_mode<synchronous>, transform_indices = @transform_2, window_bounds = array<i64: 1, 32>}, {pipeline_mode = #tpu.pipeline_mode<synchronous>, transform_indices = @transform_3, window_bounds = array<i64: 32, 16>}, {pipeline_mode = #tpu.pipeline_mode<synchronous>, transform_indices = @transform_4, window_bounds = array<i64: 1, 16>}, {pipeline_mode = #tpu.pipeline_mode<synchronous>, transform_indices = @transform_5, window_bounds = array<i64: 16, 16>}, {pipeline_mode = #tpu.pipeline_mode<synchronous>, transform_indices = @transform_6, window_bounds = array<i64: 1, 16>}, {pipeline_mode = #tpu.pipeline_mode<synchronous>, transform_indices = @transform_7, window_bounds = array<i64: 16, 32>}, {pipeline_mode = #tpu.pipeline_mode<synchronous>, transform_indices = @transform_8, window_bounds = array<i64: 16, 32>}, {pipeline_mode = #tpu.pipeline_mode<synchronous>, transform_indices = @transform_9, window_bounds = array<i64: 1, 32>}, {pipeline_mode = #tpu.pipeline_mode<synchronous>, transform_indices = @transform_10, window_bounds = array<i64: 16, 32>}, {pipeline_mode = #tpu.pipeline_mode<synchronous>, transform_indices = @transform_11, window_bounds = array<i64: 16, 32>}, {pipeline_mode = #tpu.pipeline_mode<synchronous>, transform_indices = @transform_12, window_bounds = array<i64: 32, 32>}, {pipeline_mode = #tpu.pipeline_mode<synchronous>, transform_indices = @transform_13, window_bounds = array<i64: 1, 32>}, {pipeline_mode = #tpu.pipeline_mode<synchronous>, transform_indices = @transform_14, window_bounds = array<i64: 32, 4>}, {pipeline_mode = #tpu.pipeline_mode<synchronous>, transform_indices = @transform_15, window_bounds = array<i64: 1, 4>}, {transform_indices = @transform_16, window_bounds = array<i64: 8, 4>}]} {
    %c0 = arith.constant 0 : index
    %c0_0 = arith.constant 0 : index
    %0 = vector.load %arg1[%c0, %c0_0] : memref<8x16xf32, #tpu.memory_space<vmem>>, vector<8x16xf32>
    %c0_1 = arith.constant 0 : index
    %c0_2 = arith.constant 0 : index
    %1 = vector.load %arg2[%c0_1, %c0_2] : memref<16x32xf32, #tpu.memory_space<vmem>>, vector<16x32xf32>
    %cst = arith.constant dense<0.000000e+00> : vector<8x32xf32>
    %2 = tpu.matmul %0, %1, %cst {dimension_numbers = #tpu.dot_dimension_numbers<[1], [0], [0], [1], [0, 0, 1, 1], [], []>} : vector<8x16xf32>, vector<16x32xf32>, vector<8x32xf32> -> vector<8x32xf32>
    %c0_3 = arith.constant 0 : index
    %c0_4 = arith.constant 0 : index
    %3 = vector.load %arg3[%c0_3, %c0_4] : memref<1x32xf32, #tpu.memory_space<vmem>>, vector<1x32xf32>
    %4 = vector.broadcast %3 : vector<1x32xf32> to vector<8x32xf32>
    %5 = arith.addf %2, %4 : vector<8x32xf32>
    %cst_5 = arith.constant 0.000000e+00 : f32
    %6 = vector.broadcast %cst_5 : f32 to vector<8x32xf32>
    %7 = arith.maximumf %5, %6 : vector<8x32xf32>
    %c0_6 = arith.constant 0 : index
    %c0_7 = arith.constant 0 : index
    %8 = vector.load %arg4[%c0_6, %c0_7] : memref<32x16xf32, #tpu.memory_space<vmem>>, vector<32x16xf32>
    %cst_8 = arith.constant dense<0.000000e+00> : vector<8x16xf32>
    %9 = tpu.matmul %7, %8, %cst_8 {dimension_numbers = #tpu.dot_dimension_numbers<[1], [0], [0], [1], [0, 0, 1, 1], [], []>} : vector<8x32xf32>, vector<32x16xf32>, vector<8x16xf32> -> vector<8x16xf32>
    %c0_9 = arith.constant 0 : index
    %c0_10 = arith.constant 0 : index
    %10 = vector.load %arg5[%c0_9, %c0_10] : memref<1x16xf32, #tpu.memory_space<vmem>>, vector<1x16xf32>
    %11 = vector.broadcast %10 : vector<1x16xf32> to vector<8x16xf32>
    %12 = arith.addf %9, %11 : vector<8x16xf32>
    %c0_11 = arith.constant 0 : index
    %c0_12 = arith.constant 0 : index
    %13 = vector.load %arg6[%c0_11, %c0_12] : memref<16x16xf32, #tpu.memory_space<vmem>>, vector<16x16xf32>
    %cst_13 = arith.constant dense<0.000000e+00> : vector<8x16xf32>
    %14 = tpu.matmul %12, %13, %cst_13 {dimension_numbers = #tpu.dot_dimension_numbers<[1], [0], [0], [1], [0, 0, 1, 1], [], []>} : vector<8x16xf32>, vector<16x16xf32>, vector<8x16xf32> -> vector<8x16xf32>
    %c0_14 = arith.constant 0 : index
    %c0_15 = arith.constant 0 : index
    %15 = vector.load %arg7[%c0_14, %c0_15] : memref<1x16xf32, #tpu.memory_space<vmem>>, vector<1x16xf32>
    %16 = vector.broadcast %15 : vector<1x16xf32> to vector<8x16xf32>
    %17 = arith.addf %14, %16 : vector<8x16xf32>
    %cst_16 = arith.constant 0.000000e+00 : f32
    %18 = vector.broadcast %cst_16 : f32 to vector<8x16xf32>
    %19 = arith.maximumf %17, %18 : vector<8x16xf32>
    %c0_17 = arith.constant 0 : index
    %c0_18 = arith.constant 0 : index
    %20 = vector.load %arg8[%c0_17, %c0_18] : memref<16x32xf32, #tpu.memory_space<vmem>>, vector<16x32xf32>
    %cst_19 = arith.constant dense<0.000000e+00> : vector<8x32xf32>
    %21 = tpu.matmul %12, %20, %cst_19 {dimension_numbers = #tpu.dot_dimension_numbers<[1], [0], [0], [1], [0, 0, 1, 1], [], []>} : vector<8x16xf32>, vector<16x32xf32>, vector<8x32xf32> -> vector<8x32xf32>
    %c0_20 = arith.constant 0 : index
    %c0_21 = arith.constant 0 : index
    %22 = vector.load %arg9[%c0_20, %c0_21] : memref<16x32xf32, #tpu.memory_space<vmem>>, vector<16x32xf32>
    %cst_22 = arith.constant dense<0.000000e+00> : vector<8x32xf32>
    %23 = tpu.matmul %19, %22, %cst_22 {dimension_numbers = #tpu.dot_dimension_numbers<[1], [0], [0], [1], [0, 0, 1, 1], [], []>} : vector<8x16xf32>, vector<16x32xf32>, vector<8x32xf32> -> vector<8x32xf32>
    %24 = arith.addf %21, %23 : vector<8x32xf32>
    %c0_23 = arith.constant 0 : index
    %c0_24 = arith.constant 0 : index
    %25 = vector.load %arg10[%c0_23, %c0_24] : memref<1x32xf32, #tpu.memory_space<vmem>>, vector<1x32xf32>
    %26 = vector.broadcast %25 : vector<1x32xf32> to vector<8x32xf32>
    %27 = arith.addf %24, %26 : vector<8x32xf32>
    %cst_25 = arith.constant 0.000000e+00 : f32
    %28 = vector.broadcast %cst_25 : f32 to vector<8x32xf32>
    %29 = arith.maximumf %27, %28 : vector<8x32xf32>
    %c0_26 = arith.constant 0 : index
    %c0_27 = arith.constant 0 : index
    %30 = vector.load %arg11[%c0_26, %c0_27] : memref<16x32xf32, #tpu.memory_space<vmem>>, vector<16x32xf32>
    %cst_28 = arith.constant dense<0.000000e+00> : vector<8x32xf32>
    %31 = tpu.matmul %12, %30, %cst_28 {dimension_numbers = #tpu.dot_dimension_numbers<[1], [0], [0], [1], [0, 0, 1, 1], [], []>} : vector<8x16xf32>, vector<16x32xf32>, vector<8x32xf32> -> vector<8x32xf32>
    %c0_29 = arith.constant 0 : index
    %c0_30 = arith.constant 0 : index
    %32 = vector.load %arg12[%c0_29, %c0_30] : memref<16x32xf32, #tpu.memory_space<vmem>>, vector<16x32xf32>
    %cst_31 = arith.constant dense<0.000000e+00> : vector<8x32xf32>
    %33 = tpu.matmul %19, %32, %cst_31 {dimension_numbers = #tpu.dot_dimension_numbers<[1], [0], [0], [1], [0, 0, 1, 1], [], []>} : vector<8x16xf32>, vector<16x32xf32>, vector<8x32xf32> -> vector<8x32xf32>
    %34 = arith.addf %31, %33 : vector<8x32xf32>
    %c0_32 = arith.constant 0 : index
    %c0_33 = arith.constant 0 : index
    %35 = vector.load %arg13[%c0_32, %c0_33] : memref<32x32xf32, #tpu.memory_space<vmem>>, vector<32x32xf32>
    %cst_34 = arith.constant dense<0.000000e+00> : vector<8x32xf32>
    %36 = tpu.matmul %29, %35, %cst_34 {dimension_numbers = #tpu.dot_dimension_numbers<[1], [0], [0], [1], [0, 0, 1, 1], [], []>} : vector<8x32xf32>, vector<32x32xf32>, vector<8x32xf32> -> vector<8x32xf32>
    %37 = arith.addf %34, %36 : vector<8x32xf32>
    %c0_35 = arith.constant 0 : index
    %c0_36 = arith.constant 0 : index
    %38 = vector.load %arg14[%c0_35, %c0_36] : memref<1x32xf32, #tpu.memory_space<vmem>>, vector<1x32xf32>
    %39 = vector.broadcast %38 : vector<1x32xf32> to vector<8x32xf32>
    %40 = arith.addf %37, %39 : vector<8x32xf32>
    %cst_37 = arith.constant 0.000000e+00 : f32
    %41 = vector.broadcast %cst_37 : f32 to vector<8x32xf32>
    %42 = arith.maximumf %40, %41 : vector<8x32xf32>
    %c0_38 = arith.constant 0 : index
    %c0_39 = arith.constant 0 : index
    %43 = vector.load %arg15[%c0_38, %c0_39] : memref<32x4xf32, #tpu.memory_space<vmem>>, vector<32x4xf32>
    %cst_40 = arith.constant dense<0.000000e+00> : vector<8x4xf32>
    %44 = tpu.matmul %42, %43, %cst_40 {dimension_numbers = #tpu.dot_dimension_numbers<[1], [0], [0], [1], [0, 0, 1, 1], [], []>} : vector<8x32xf32>, vector<32x4xf32>, vector<8x4xf32> -> vector<8x4xf32>
    %c0_41 = arith.constant 0 : index
    %c0_42 = arith.constant 0 : index
    %45 = vector.load %arg16[%c0_41, %c0_42] : memref<1x4xf32, #tpu.memory_space<vmem>>, vector<1x4xf32>
    %46 = vector.broadcast %45 : vector<1x4xf32> to vector<8x4xf32>
    %47 = arith.addf %44, %46 : vector<8x4xf32>
    %48 = math.tanh %47 : vector<8x4xf32>
    %c0_43 = arith.constant 0 : index
    %c0_44 = arith.constant 0 : index
    %49 = vector.load %arg17[%c0_43, %c0_44] : memref<8x4xf32, #tpu.memory_space<vmem>>, vector<8x4xf32>
    tpu.vector_store %arg17[%c0_43, %c0_44], %48 {strides = array<i32>} : memref<8x4xf32, #tpu.memory_space<vmem>>, vector<8x4xf32>,
    return
  }
  func.func @transform_0(%arg0: i32) -> (i32, i32) {
    %c0_i32 = arith.constant 0 : i32
    %c0_i32_0 = arith.constant 0 : i32
    return %arg0, %c0_i32 : i32, i32
  }
  func.func @transform_1(%arg0: i32) -> (i32, i32) {
    %c0_i32 = arith.constant 0 : i32
    %c0_i32_0 = arith.constant 0 : i32
    %c0_i32_1 = arith.constant 0 : i32
    return %c0_i32, %c0_i32_0 : i32, i32
  }
  func.func @transform_2(%arg0: i32) -> (i32, i32) {
    %c0_i32 = arith.constant 0 : i32
    %c0_i32_0 = arith.constant 0 : i32
    %c0_i32_1 = arith.constant 0 : i32
    return %c0_i32, %c0_i32_0 : i32, i32
  }
  func.func @transform_3(%arg0: i32) -> (i32, i32) {
    %c0_i32 = arith.constant 0 : i32
    %c0_i32_0 = arith.constant 0 : i32
    %c0_i32_1 = arith.constant 0 : i32
    return %c0_i32, %c0_i32_0 : i32, i32
  }
  func.func @transform_4(%arg0: i32) -> (i32, i32) {
    %c0_i32 = arith.constant 0 : i32
    %c0_i32_0 = arith.constant 0 : i32
    %c0_i32_1 = arith.constant 0 : i32
    return %c0_i32, %c0_i32_0 : i32, i32
  }
  func.func @transform_5(%arg0: i32) -> (i32, i32) {
    %c0_i32 = arith.constant 0 : i32
    %c0_i32_0 = arith.constant 0 : i32
    %c0_i32_1 = arith.constant 0 : i32
    return %c0_i32, %c0_i32_0 : i32, i32
  }
  func.func @transform_6(%arg0: i32) -> (i32, i32) {
    %c0_i32 = arith.constant 0 : i32
    %c0_i32_0 = arith.constant 0 : i32
    %c0_i32_1 = arith.constant 0 : i32
    return %c0_i32, %c0_i32_0 : i32, i32
  }
  func.func @transform_7(%arg0: i32) -> (i32, i32) {
    %c0_i32 = arith.constant 0 : i32
    %c0_i32_0 = arith.constant 0 : i32
    %c0_i32_1 = arith.constant 0 : i32
    return %c0_i32, %c0_i32_0 : i32, i32
  }
  func.func @transform_8(%arg0: i32) -> (i32, i32) {
    %c0_i32 = arith.constant 0 : i32
    %c0_i32_0 = arith.constant 0 : i32
    %c0_i32_1 = arith.constant 0 : i32
    return %c0_i32, %c0_i32_0 : i32, i32
  }
  func.func @transform_9(%arg0: i32) -> (i32, i32) {
    %c0_i32 = arith.constant 0 : i32
    %c0_i32_0 = arith.constant 0 : i32
    %c0_i32_1 = arith.constant 0 : i32
    return %c0_i32, %c0_i32_0 : i32, i32
  }
  func.func @transform_10(%arg0: i32) -> (i32, i32) {
    %c0_i32 = arith.constant 0 : i32
    %c0_i32_0 = arith.constant 0 : i32
    %c0_i32_1 = arith.constant 0 : i32
    return %c0_i32, %c0_i32_0 : i32, i32
  }
  func.func @transform_11(%arg0: i32) -> (i32, i32) {
    %c0_i32 = arith.constant 0 : i32
    %c0_i32_0 = arith.constant 0 : i32
    %c0_i32_1 = arith.constant 0 : i32
    return %c0_i32, %c0_i32_0 : i32, i32
  }
  func.func @transform_12(%arg0: i32) -> (i32, i32) {
    %c0_i32 = arith.constant 0 : i32
    %c0_i32_0 = arith.constant 0 : i32
    %c0_i32_1 = arith.constant 0 : i32
    return %c0_i32, %c0_i32_0 : i32, i32
  }
  func.func @transform_13(%arg0: i32) -> (i32, i32) {
    %c0_i32 = arith.constant 0 : i32
    %c0_i32_0 = arith.constant 0 : i32
    %c0_i32_1 = arith.constant 0 : i32
    return %c0_i32, %c0_i32_0 : i32, i32
  }
  func.func @transform_14(%arg0: i32) -> (i32, i32) {
    %c0_i32 = arith.constant 0 : i32
    %c0_i32_0 = arith.constant 0 : i32
    %c0_i32_1 = arith.constant 0 : i32
    return %c0_i32, %c0_i32_0 : i32, i32
  }
  func.func @transform_15(%arg0: i32) -> (i32, i32) {
    %c0_i32 = arith.constant 0 : i32
    %c0_i32_0 = arith.constant 0 : i32
    %c0_i32_1 = arith.constant 0 : i32
    return %c0_i32, %c0_i32_0 : i32, i32
  }
  func.func @transform_16(%arg0: i32) -> (i32, i32) {
    %c0_i32 = arith.constant 0 : i32
    %c0_i32_0 = arith.constant 0 : i32
    return %arg0, %c0_i32 : i32, i32
  }
}

</mosaic_0001>

<bundles_post_ra>
// kernel: l2shared_dpg_forward.1
= control target key start
LH: loop header
LB: loop body
LE: loop exit
PB: predicated region body
PF: predicated region fallthrough
CT: control target
= control target key end

     0   :  { %v948_v0 = vmov 0.0|0.0   ;;  %vm949_vm0 = vmmov 0   ;;  %v950_v3 = vmov 0.0   ;;  %vm63_vm1 = vcmask 130048   ;;  %s1171_s1 = inlined_call_operand.vmem [shape: f32[16,32], index: 1, kind: input, shape index: {}]   ;;  %s1172_s3 = inlined_call_operand.vmem [shape: f32[32,16], index: 3, kind: input, shape index: {}]   ;;  %s1173_s0 = inlined_call_operand.vmem [shape: f32[8,16], index: 0, kind: input, shape index: {}]   ;;  %s1174_s5 = inlined_call_operand.vmem [shape: f32[16,16], index: 5, kind: input, shape index: {}]   ;;  %s1175_s2 = inlined_call_operand.vmem [shape: f32[1,32], index: 2, kind: input, shape index: {}]   ;;  %s1176_s7 = inlined_call_operand.vmem [shape: f32[16,32], index: 7, kind: input, shape index: {}]   ;;  %s1177_s10 = inlined_call_operand.vmem [shape: f32[16,32], index: 10, kind: input, shape index: {}]   ;;  %s1178_s4 = inlined_call_operand.vmem [shape: f32[1,16], index: 4, kind: input, shape index: {}]   ;;  %s1179_s8 = inlined_call_operand.vmem [shape: f32[16,32], index: 8, kind: input, shape index: {}]   ;;  %s1180_s6 = inlined_call_operand.vmem [shape: f32[1,16], index: 6, kind: input, shape index: {}]   ;;  %s1181_s11 = inlined_call_operand.vmem [shape: f32[16,32], index: 11, kind: input, shape index: {}]   ;;  %s1182_s12 = inlined_call_operand.vmem [shape: f32[32,32], index: 12, kind: input, shape index: {}]   ;;  %s1183_s9 = inlined_call_operand.vmem [shape: f32[1,32], index: 9, kind: input, shape index: {}]   ;;  %s1184_s14 = inlined_call_operand.vmem [shape: f32[32,4], index: 14, kind: input, shape index: {}]   ;;  %s1185_s13 = inlined_call_operand.vmem [shape: f32[1,32], index: 13, kind: input, shape index: {}]   ;;  %s1186_s15 = inlined_call_operand.vmem [shape: f32[1,4], index: 15, kind: input, shape index: {}]   ;;  %s1187_s16 = inlined_call_operand.vmem [shape: f32[8,4], index: 16, kind: output, shape index: {}]  }
   0x1   :  { %1189 = sst [smem:[#allocation2_spill]] %s1171_s1  ;;  %907 = vmatprep.subr.bf16.mxu0 %v948_v0  ;;  %836 = vmatprep.mubr.msk.f32.mxu0 %vm949_vm0, %v950_v3  ;;  %v138_v5 = vld [vmem:[%s1172_s3] sm:$0xff]  ;;  %v139_v6 = vld [vmem:[%s1172_s3 + $0x8] sm:$0xff]  ;;  %v140_v9 = vld [vmem:[%s1172_s3 + $0x10] sm:$0xff]  ;;  %vm149_vm2 = vcmask 261120   ;;  %vm778_vm3 = vcmask 31744  }
   0x2   :  { %s1190_s23 = sld [smem:[#allocation2_spill]]  ;;  %910 = vmatprep.subr.bf16.mxu1 %v948_v0  ;;  %847 = vmatprep.mubr.msk.f32.mxu1 %vm949_vm0, %v950_v3  ;;  %v911_v7 = vpack.c.bf16 %v139_v6, %v138_v5  ;;  %v53_v8 = vld [vmem:[%s1173_s0] sm:$0xff]  ;;  %v141_v10 = vld [vmem:[%s1172_s3 + $0x18] sm:$0xff]  ;;  %v224_v13 = vld [vmem:[%s1174_s5 + $0x8] sm:$0xff] }
   0x3   :  { %v914_v11 = vpack.c.bf16 %v141_v10, %v140_v9  ;;  %v223_v12 = vld [vmem:[%s1174_s5] sm:$0xff]  ;;  %v307_v21 = vld [vmem:[%s1176_s7 + $0x8] sm:$0xff]  ;;  %v608_v48 = vld [vmem:[%s1182_s12 + $0x10] sm:$0xff] }
   0x4   :  { %912 = vmatpush3.bf16.msra.mxu1 %v911_v7  ;;  %v917_v14 = vpack.c.bf16 %v224_v13, %v223_v12  ;;  %v784_v15 = vld [vmem:[%s1175_s2] ss:$0 sm:$0xff]  ;;  %v463_v24 = vld [vmem:[%s1177_s10 + $0x8] sm:$0xff]  ;;  %v609_v49 = vld [vmem:[%s1182_s12 + $0x18] sm:$0xff] }
   0x5   :  { %913 = vmatprep.subr.bf16.mxu1 %v948_v0  ;;  %v306_v20 = vld [vmem:[%s1176_s7] sm:$0xff]  ;;  %v309_v31 = vld [vmem:[%s1179_s8 + $0x8] sm:$0xff]  ;;  %v935_v50 = vpack.c.bf16 %v609_v49, %v608_v48  ;;  %v695_v63 = vld [vmem:[%s1184_s14 + $0x10] sm:$0xff] }
   0x6   :  { %v923_v22 = vpack.c.bf16 %v307_v21, %v306_v20  ;;  %v462_v23 = vld [vmem:[%s1177_s10] sm:$0xff]  ;;  %v465_v35 = vld [vmem:[%s1181_s11 + $0x8] sm:$0xff] }
   0x7   :  { %v786_v25 = vld [vmem:[%s1178_s4] ss:$0 sm:$0xff]  ;;  %v929_v27 = vpack.c.bf16 %v463_v24, %v462_v23  ;;  %v607_v46 = vld [vmem:[%s1182_s12 + $0x8] sm:$0xff] }
   0x8   :  { %v54_v1 = vld [vmem:[%s1190_s23] sm:$0xff]  ;;  %v55_v2 = vld [vmem:[%s1190_s23 + $0x8] sm:$0xff]  ;;  %915 = vmatpush3.bf16.msra.mxu1 %v914_v11 }
   0x9   :  { %v908_v4 = vpack.c.bf16 %v55_v2, %v54_v1  ;;  %922 = vmatprep.subr.bf16.mxu1 %v948_v0  ;;  %v308_v30 = vld [vmem:[%s1179_s8] sm:$0xff]  ;;  %v694_v61 = vld [vmem:[%s1184_s14 + $0x8] sm:$0xff]  ;;  %v696_v1 = vld [vmem:[%s1184_s14 + $0x18] sm:$0xff] }
   0xa   :  { %v920_v32 = vpack.c.bf16 %v309_v31, %v308_v30  ;;  %v788_v33 = vld [vmem:[%s1180_s6] ss:$0 sm:$0xff]  ;;  %v941_v2 = vpack.c.bf16 %v696_v1, %v695_v63 }
   0xb   :  { %909 = vmatpush3.bf16.msra.mxu0 %v908_v4  ;;  %v464_v34 = vld [vmem:[%s1181_s11] sm:$0xff] }
   0xc   :  { %916 = vmatprep.subr.bf16.mxu0 %v948_v0  ;;  %v926_v41 = vpack.c.bf16 %v465_v35, %v464_v34  ;;  %v606_v45 = vld [vmem:[%s1182_s12] sm:$0xff] }
   0xd   :  { %v932_v47 = vpack.c.bf16 %v607_v46, %v606_v45  ;;  %v792_v52 = vld [vmem:[%s1183_s9] ss:$0 sm:$0xff] }
   0xe   :  { %837 = vmatmul.mubr.msk.f32.vlgmr.msra.gmra.mrb[0].mxu0 %vm63_vm1, %v53_v8  ;;  %v693_v60 = vld [vmem:[%s1184_s14] sm:$0xff] }
   0xf   :  { %854 = vmatprep.mubr.msk.f32.mxu0 %vm949_vm0, %v950_v3  ;;  %918 = vmatpush3.bf16.msra.mxu0 %v917_v14  ;;  %v938_v62 = vpack.c.bf16 %v694_v61, %v693_v60  ;;  %v796_v4 = vld [vmem:[%s1185_s13] ss:$0 sm:$0xff] }
  0x10   :  { %919 = vmatprep.subr.bf16.mxu0 %v948_v0 }
  0xe1   :  { %v133_v16 = vpop.f32.mrb[0].mxu0 }
  0xe2   :  { %v134_v17 = vadd.f32 %v784_v15, %v133_v16  ;;  %v838_v18 = vpop.f32.mrb[1].mxu0 }
  0xe4   :  { %v137_v19 = vmax.f32 %v134_v17, 0.0 }
  0xe6   :  { %848 = vmatmul.mubr.msk.f32.vlgmr.msra.gmra.mrb[0].mxu1 %vm149_vm2, %v137_v19 }
  0xe7   :  { %868 = vmatprep.mubr.msk.f32.mxu1 %vm949_vm0, %v950_v3  ;;  %924 = vmatpush3.bf16.msra.mxu1 %v923_v22 }
  0xe8   :  { %928 = vmatprep.subr.bf16.mxu1 %v948_v0 }
 0x1b9   :  { %v219_v26 = vpop.f32.mrb[0].mxu1 }
 0x1ba   :  { %v220_v28 = vadd.f32 %v786_v25, %v219_v26  ;;  %v849_v29 = vpop.f32.mrb[1].mxu1 }
 0x1bc   :  { %855 = vmatmul.mubr.msk.f32.vlgmr.msra.gmra.mrb[2].mxu0 %vm63_vm1, %v220_v28  ;;  %869 = vmatmul.mubr.msk.f32.vlgmr.msra.gmra.mrb[2].mxu1 %vm63_vm1, %v220_v28 }
 0x1bd   :  { %930 = vmatpush3.bf16.msra.mxu1 %v929_v27  ;;  %882 = vmatprep.mubr.msk.f32.mxu1 %vm949_vm0, %v950_v3 }
 0x1be   :  { %861 = vmatprep.mubr.msk.f32.mxu0 %vm949_vm0, %v950_v3  ;;  %937 = vmatprep.subr.bf16.mxu1 %v948_v0 }
 0x1bf   :  { %921 = vmatpush3.bf16.msra.mxu0 %v920_v32 }
 0x1c0   :  { %883 = vmatmul.mubr.msk.f32.vlgmr.msra.gmra.mrb[4].mxu1 %vm63_vm1, %v220_v28  ;;  %925 = vmatprep.subr.bf16.mxu0 %v948_v0 }
 0x1c1   :  { %904 = vmatprep.mubr.msk.f32.mxu1 %vm949_vm0, %v950_v3  ;;  %939 = vmatpush3.bf16.msra.mxu1 %v938_v62 }
 0x1c2   :  { %940 = vmatprep.subr.bf16.mxu1 %v948_v0 }
 0x1c5   :  { %942 = vmatpush3.bf16.msra.mxu1 %v941_v2 }
 0x28f   :  { %v301_v36 = vpop.f32.mrb[2].mxu0  ;;  %v449_v37 = vpop.f32.mrb[2].mxu1 }
 0x290   :  { %v302_v38 = vadd.f32 %v788_v33, %v301_v36  ;;  %v856_v39 = vpop.f32.mrb[3].mxu0  ;;  %v870_v40 = vpop.f32.mrb[3].mxu1 }
 0x292   :  { %v305_v42 = vmax.f32 %v302_v38, 0.0 }
 0x293   :  { %v602_v43 = vpop.f32.mrb[4].mxu1 }
 0x294   :  { %862 = vmatmul.mubr.msk.f32.vlgmr.msra.gmra.mrb[4].mxu0 %vm63_vm1, %v305_v42  ;;  %v884_v44 = vpop.f32.mrb[5].mxu1 }
 0x295   :  { %927 = vmatpush3.bf16.msra.mxu0 %v926_v41  ;;  %875 = vmatprep.mubr.msk.f32.mxu0 %vm949_vm0, %v950_v3 }
 0x296   :  { %931 = vmatprep.subr.bf16.mxu0 %v948_v0 }
 0x298   :  { %876 = vmatmul.mubr.msk.f32.vlgmr.msra.gmra.mrb[6].mxu0 %vm63_vm1, %v305_v42 }
 0x299   :  { %893 = vmatprep.mubr.msk.f32.mxu0 %vm949_vm0, %v950_v3  ;;  %933 = vmatpush3.bf16.msra.mxu0 %v932_v47 }
 0x29a   :  { %934 = vmatprep.subr.bf16.mxu0 %v948_v0  ;;  %v797_v0 = vld [vmem:[%s1186_s15] ss:$0 sm:$0xff] }
 0x29d   :  { %936 = vmatpush3.bf16.msra.mxu0 %v935_v50 }
 0x367   :  { %v379_v51 = vpop.f32.mrb[4].mxu0 }
 0x368   :  { %v450_v53 = vadd.f32 %v449_v37, %v379_v51  ;;  %v863_v54 = vpop.f32.mrb[5].mxu0 }
 0x36a   :  { %v460_v55 = vadd.f32 %v792_v52, %v450_v53 }
 0x36b   :  { %v532_v56 = vpop.f32.mrb[6].mxu0 }
 0x36c   :  { %v461_v57 = vmax.f32 %v460_v55, 0.0  ;;  %v603_v58 = vadd.f32 %v602_v43, %v532_v56  ;;  %v877_v59 = vpop.f32.mrb[7].mxu0 }
 0x36e   :  { %894 = vmatmul.mubr.msk.f32.vlgmr.msra.gmra.mrb[8].mxu0 %vm149_vm2, %v461_v57 }
 0x441   :  { %v679_v3 = vpop.f32.mrb[8].mxu0 }
 0x442   :  { %v683_v5 = vadd.f32 %v679_v3, %v603_v58  ;;  %v895_v6 = vpop.f32.mrb[9].mxu0 }
 0x444   :  { %v691_v7 = vadd.f32 %v796_v4, %v683_v5 }
 0x446   :  { %v692_v8 = vmax.f32 %v691_v7, 0.0 }
 0x448   :  { %905 = vmatmul.mubr.msk.f32.vlgmr.msra.gmra.mrb[6].mxu1 %vm149_vm2, %v692_v8 }
 0x51b   :  { %v773_v9 = vpop.f32.mrb[6].mxu1 }
 0x51c   :  { %v774_v10 = vadd.f32 %v797_v0, %v773_v9  ;;  %v906_v11 = vpop.f32.mrb[7].mxu1 }
 0x51e   :  { %946 = vtanh.f32 %v774_v10 }
 0x528   :  { %v947_v12 = vpop.eup %946 }
 0x529   :  { %779 = vst.msk [vmem:[%s1187_s16] sm:$0xff] %vm778_vm3, %v947_v12 }

</bundles_post_ra>
